<compile_context>
chip_gen: v5e
topology: v5e:2x2
jax: 0.10.0
libtpu: 0.0.40
codegen_flags: <defaults>
</compile_context>

<pallas_src>
import math
import jax
import jax.numpy as jnp
from jax import lax
from jax.experimental import pallas as pl
from jax.experimental.pallas import tpu as pltpu

# ---- problem sizes (small, consistent with the module) --------------------
B, S, D = 2, 8, 32            # batch, patch_num, embed_dim
NUM_HEADS = 2
HEAD_DIM = 64                 # AttentionSuper(change_qkv=True) fixes head_dim = 64
ATTN_DIM = NUM_HEADS * HEAD_DIM       # 128
MLP_RATIO = 4.0
FFN = int(MLP_RATIO * D)              # 128
SCALE = HEAD_DIM ** -0.5
EPS = 1e-5
ROWS = B * S

# packed-slab geometry (all block boundaries are multiples of 128 lanes / 8 sublanes)
QKV_COLS = (2 + NUM_HEADS) * ATTN_DIM       # 512: [q | k_h0_sel | k_h1_sel | v]
SLAB_A_COLS = QKV_COLS + FFN                # 640: ... | fc1_w
SLAB_B_ROWS = NUM_HEADS * ATTN_DIM + FFN    # 384: proj(h0) ; proj(h1) ; fc2_w


def _layernorm(v, w, b):
    mu = jnp.mean(v, axis=-1, keepdims=True)
    var = jnp.mean((v - mu) ** 2, axis=-1, keepdims=True)
    return (v - mu) * lax.rsqrt(var + EPS) * w + b


def _gelu_tanh(x):
    # tanh-approximate GELU; max abs error vs exact erf-GELU ~3e-4, well inside
    # the 1e-3 test tolerance (jnp.tanh lowers to the EUP slot).
    c = math.sqrt(2.0 / math.pi)
    return 0.5 * x * (1.0 + jnp.tanh(c * (x + 0.044715 * (x * x * x))))


def encoder_layer_kernel(x_ref, wa_ref, wb_ref, vec_ref, o_ref):
    x = x_ref[...]                                            # (ROWS, D) f32

    # small vectors: one per sublane row, lane offset 0 (aligned starts)
    vec = vec_ref[...]                                        # (8, 128)
    ln1_w = vec[0:1, :D]
    ln1_b = vec[1:2, :D]
    proj_b = vec[2:3, :D]
    ln2_w = vec[3:4, :D]
    ln2_b = vec[4:5, :D]
    fc2_b = vec[5:6, :D]
    fc1_b = vec[6:7, :FFN]

    # --- attention block ----------------------------------------------------
    xn = _layernorm(x, ln1_w, ln1_b)
    # one matmul produces q (scale pre-folded), per-head-masked k blocks and v;
    # every column block below starts at a multiple of 128 lanes.
    qkv = jnp.dot(xn, wa_ref[:, :QKV_COLS],
                  preferred_element_type=jnp.float32)         # (ROWS, 512)

    q = qkv[:, 0:ATTN_DIM].reshape(B, S, ATTN_DIM)            # both heads
    v = qkv[:, (1 + NUM_HEADS) * ATTN_DIM:
               (2 + NUM_HEADS) * ATTN_DIM].reshape(B, S, ATTN_DIM)

    attn = jnp.zeros((ROWS, D), jnp.float32)
    for h in range(NUM_HEADS):                                # static unroll (2)
        # head-h K block: only head-h columns are non-zero, so contracting over
        # the full 128 dims yields exactly head-h scores (scale already in q).
        k_h = qkv[:, (1 + h) * ATTN_DIM:
                     (2 + h) * ATTN_DIM].reshape(B, S, ATTN_DIM)
        s = jnp.einsum('bqd,bkd->bqk', q, k_h,
                       preferred_element_type=jnp.float32)    # (B, S, S)
        s = s - jnp.max(s, axis=-1, keepdims=True)
        p = jnp.exp(s)
        p = p * pl.reciprocal(jnp.sum(p, axis=-1, keepdims=True), approx=True)
        o_h = jnp.einsum('bqk,bkd->bqd', p, v,
                         preferred_element_type=jnp.float32)  # (B, S, 128)
        # head-selective projection rows (other head's rows are zero) pick the
        # correct 64 columns of o_h and fold the head-concat into the matmul.
        attn = attn + jnp.dot(
            o_h.reshape(ROWS, ATTN_DIM),
            wb_ref[h * ATTN_DIM:(h + 1) * ATTN_DIM, :],
            preferred_element_type=jnp.float32)               # (ROWS, D)

    x1 = x + attn + proj_b                                    # residual + proj bias

    # --- MLP block ------------------------------------------------------------
    xn2 = _layernorm(x1, ln2_w, ln2_b)
    h1 = jnp.dot(xn2, wa_ref[:, QKV_COLS:],
                 preferred_element_type=jnp.float32) + fc1_b  # (ROWS, FFN)
    h1 = _gelu_tanh(h1)
    h2 = jnp.dot(h1, wb_ref[NUM_HEADS * ATTN_DIM:, :],
                 preferred_element_type=jnp.float32) + fc2_b  # (ROWS, D)

    o_ref[...] = (x1 + h2).astype(o_ref.dtype)


def pack_params(p):
    """One-time host-side packing of the 11 weights into 3 VMEM slabs.

    qkv_w column layout (PyTorch / reference order): [q_h0 q_h1 k_h0 k_h1 v_h0 v_h1],
    each HEAD_DIM wide.  SCALE is folded into the q columns here.
    """
    qkv_w = p["qkv_w"]                                   # (D, 3*ATTN_DIM)
    w_q = qkv_w[:, 0:ATTN_DIM] * SCALE
    w_k = qkv_w[:, ATTN_DIM:2 * ATTN_DIM]
    w_v = qkv_w[:, 2 * ATTN_DIM:3 * ATTN_DIM]

    # per-head masked K blocks: head-h columns kept (natural positions), rest 0
    k_blocks = []
    for h in range(NUM_HEADS):
        blk = jnp.zeros((D, ATTN_DIM), jnp.float32)
        blk = blk.at[:, h * HEAD_DIM:(h + 1) * HEAD_DIM].set(
            w_k[:, h * HEAD_DIM:(h + 1) * HEAD_DIM])
        k_blocks.append(blk)
    slab_a = jnp.concatenate([w_q] + k_blocks + [w_v, p["fc1_w"]], axis=1)
    assert slab_a.shape == (D, SLAB_A_COLS)

    # per-head selective projection row blocks: head-h rows kept, rest 0
    proj_w = p["proj_w"]                                 # (ATTN_DIM, D)
    proj_blocks = []
    for h in range(NUM_HEADS):
        blk = jnp.zeros((ATTN_DIM, D), jnp.float32)
        blk = blk.at[h * HEAD_DIM:(h + 1) * HEAD_DIM, :].set(
            proj_w[h * HEAD_DIM:(h + 1) * HEAD_DIM, :])
        proj_blocks.append(blk)
    slab_b = jnp.concatenate(proj_blocks + [p["fc2_w"]], axis=0)
    assert slab_b.shape == (SLAB_B_ROWS, D)

    # small vectors: one per sublane row of an (8, 128) slab
    vec = jnp.zeros((8, 128), jnp.float32)
    vec = vec.at[0, :D].set(p["ln1_w"][0])
    vec = vec.at[1, :D].set(p["ln1_b"][0])
    vec = vec.at[2, :D].set(p["proj_b"][0])
    vec = vec.at[3, :D].set(p["ln2_w"][0])
    vec = vec.at[4, :D].set(p["ln2_b"][0])
    vec = vec.at[5, :D].set(p["fc2_b"][0])
    vec = vec.at[6, :FFN].set(p["fc1_b"][0])
    return slab_a, slab_b, vec


def transformer_encoder_layer(x, packed):
    """x: (B, S, D) float32; packed: (slab_a, slab_b, vec) from pack_params."""
    b, s, d = x.shape
    xf = x.reshape(b * s, d)                              # fold batch into rows

    vmem = pl.BlockSpec(memory_space=pltpu.MemorySpace.VMEM)
    out = pl.pallas_call(
        encoder_layer_kernel,
        out_shape=jax.ShapeDtypeStruct((b * s, d), jnp.float32),
        in_specs=[vmem] * 4,
        out_specs=vmem,
    )(xf, *packed)
    return out.reshape(b, s, d)


def init_params(key):
    ks = jax.random.split(key, 8)
    std = 0.02
    return {
        "ln1_w": jnp.ones((1, D), jnp.float32),
        "ln1_b": jnp.zeros((1, D), jnp.float32),
        "qkv_w": std * jax.random.normal(ks[0], (D, 3 * ATTN_DIM), jnp.float32),
        "proj_w": std * jax.random.normal(ks[1], (ATTN_DIM, D), jnp.float32),
        "proj_b": std * jax.random.normal(ks[2], (1, D), jnp.float32),
        "ln2_w": jnp.ones((1, D), jnp.float32),
        "ln2_b": jnp.zeros((1, D), jnp.float32),
        "fc1_w": std * jax.random.normal(ks[3], (D, FFN), jnp.float32),
        "fc1_b": std * jax.random.normal(ks[4], (1, FFN), jnp.float32),
        "fc2_w": std * jax.random.normal(ks[5], (FFN, D), jnp.float32),
        "fc2_b": std * jax.random.normal(ks[6], (1, D), jnp.float32),
    }


def reference(x, p):
    """Pure-JAX reference of the same forward pass (exact erf GELU)."""
    def ln(v, w, b):
        mu = jnp.mean(v, -1, keepdims=True)
        var = jnp.mean((v - mu) ** 2, -1, keepdims=True)
        return (v - mu) / jnp.sqrt(var + EPS) * w + b

    res = x
    xn = ln(x, p["ln1_w"][0], p["ln1_b"][0])
    qkv = xn @ p["qkv_w"]                                    # (B, S, 3*H*hd)
    qkv = qkv.reshape(B, S, 3, NUM_HEADS, HEAD_DIM).transpose(2, 0, 3, 1, 4)
    q, k, v = qkv[0], qkv[1], qkv[2]                         # (B, H, S, hd)
    s = jnp.einsum("bhqd,bhkd->bhqk", q, k) * SCALE
    a = jax.nn.softmax(s, axis=-1)
    o = jnp.einsum("bhqk,bhkd->bhqd", a, v)
    o = o.transpose(0, 2, 1, 3).reshape(B, S, ATTN_DIM)
    o = o @ p["proj_w"] + p["proj_b"][0]
    x1 = res + o
    res = x1
    xn2 = ln(x1, p["ln2_w"][0], p["ln2_b"][0])
    h = jax.nn.gelu(xn2 @ p["fc1_w"] + p["fc1_b"][0], approximate=False)
    h = h @ p["fc2_w"] + p["fc2_b"][0]
    return res + h


if __name__ == "__main__":
    key = jax.random.PRNGKey(0)
    kx, kp = jax.random.split(key)
    x = jax.random.normal(kx, (B, S, D), jnp.float32)
    params = init_params(kp)

    packed = pack_params(params)          # one-time host-side weight packing
    out = transformer_encoder_layer(x, packed)
    out = jax.block_until_ready(out)

    ref = jax.block_until_ready(reference(x, params))
    assert out.shape == (B, S, D)
    assert jnp.allclose(out, ref, atol=1e-3, rtol=1e-3), (
        float(jnp.max(jnp.abs(out - ref))))
    print("KERNEL_OK")
</pallas_src>

<mosaic_0001>
module attributes {stable_mosaic.version = 11 : i64} {
  func.func @encoder_layer_kernel(%arg0: memref<16x32xf32, #tpu.memory_space<vmem>>, %arg1: memref<32x640xf32, #tpu.memory_space<vmem>>, %arg2: memref<384x32xf32, #tpu.memory_space<vmem>>, %arg3: memref<8x128xf32, #tpu.memory_space<vmem>>, %arg4: memref<16x32xf32, #tpu.memory_space<vmem>>) attributes {dimension_semantics = [], scalar_prefetch = 0 : i64, scratch_operands = 0 : i64, tpu.core_type = #tpu.core_type<tc>} {
    %c0 = arith.constant 0 : index
    %c0_0 = arith.constant 0 : index
    %0 = vector.load %arg0[%c0, %c0_0] : memref<16x32xf32, #tpu.memory_space<vmem>>, vector<16x32xf32>
    %c0_1 = arith.constant 0 : index
    %c0_2 = arith.constant 0 : index
    %1 = vector.load %arg3[%c0_1, %c0_2] : memref<8x128xf32, #tpu.memory_space<vmem>>, vector<8x128xf32>
    %2 = vector.extract_strided_slice %1 {offsets = [0, 0], sizes = [1, 32], strides = [1, 1]} : vector<8x128xf32> to vector<1x32xf32>
    %3 = vector.extract_strided_slice %1 {offsets = [1, 0], sizes = [1, 32], strides = [1, 1]} : vector<8x128xf32> to vector<1x32xf32>
    %4 = vector.extract_strided_slice %1 {offsets = [2, 0], sizes = [1, 32], strides = [1, 1]} : vector<8x128xf32> to vector<1x32xf32>
    %5 = vector.extract_strided_slice %1 {offsets = [3, 0], sizes = [1, 32], strides = [1, 1]} : vector<8x128xf32> to vector<1x32xf32>
    %6 = vector.extract_strided_slice %1 {offsets = [4, 0], sizes = [1, 32], strides = [1, 1]} : vector<8x128xf32> to vector<1x32xf32>
    %7 = vector.extract_strided_slice %1 {offsets = [5, 0], sizes = [1, 32], strides = [1, 1]} : vector<8x128xf32> to vector<1x32xf32>
    %8 = vector.extract_strided_slice %1 {offsets = [6, 0], sizes = [1, 128], strides = [1, 1]} : vector<8x128xf32> to vector<1x128xf32>
    %cst = arith.constant dense<0.000000e+00> : vector<16xf32>
    %9 = vector.multi_reduction <add>, %0, %cst [1] : vector<16x32xf32> to vector<16xf32>
    %10 = vector.shape_cast %9 : vector<16xf32> to vector<16x1xf32>
    %cst_3 = arith.constant 3.200000e+01 : f32
    %11 = vector.broadcast %cst_3 : f32 to vector<16x1xf32>
    %12 = arith.divf %10, %11 : vector<16x1xf32>
    %13 = vector.broadcast %12 : vector<16x1xf32> to vector<16x32xf32>
    %14 = arith.subf %0, %13 : vector<16x32xf32>
    %15 = arith.mulf %14, %14 : vector<16x32xf32>
    %cst_4 = arith.constant dense<0.000000e+00> : vector<16xf32>
    %16 = vector.multi_reduction <add>, %15, %cst_4 [1] : vector<16x32xf32> to vector<16xf32>
    %17 = vector.shape_cast %16 : vector<16xf32> to vector<16x1xf32>
    %cst_5 = arith.constant 3.200000e+01 : f32
    %18 = vector.broadcast %cst_5 : f32 to vector<16x1xf32>
    %19 = arith.divf %17, %18 : vector<16x1xf32>
    %20 = vector.broadcast %12 : vector<16x1xf32> to vector<16x32xf32>
    %21 = arith.subf %0, %20 : vector<16x32xf32>
    %cst_6 = arith.constant 9.99999974E-6 : f32
    %22 = vector.broadcast %cst_6 : f32 to vector<16x1xf32>
    %23 = arith.addf %19, %22 : vector<16x1xf32>
    %24 = math.rsqrt %23 : vector<16x1xf32>
    %25 = vector.broadcast %24 : vector<16x1xf32> to vector<16x32xf32>
    %26 = arith.mulf %21, %25 : vector<16x32xf32>
    %27 = vector.broadcast %2 : vector<1x32xf32> to vector<16x32xf32>
    %28 = arith.mulf %26, %27 : vector<16x32xf32>
    %29 = vector.broadcast %3 : vector<1x32xf32> to vector<16x32xf32>
    %30 = arith.addf %28, %29 : vector<16x32xf32>
    %c0_7 = arith.constant 0 : index
    %c0_8 = arith.constant 0 : index
    %31 = vector.load %arg1[%c0_7, %c0_8] : memref<32x640xf32, #tpu.memory_space<vmem>>, vector<32x512xf32>
    %cst_9 = arith.constant dense<0.000000e+00> : vector<16x512xf32>
    %32 = tpu.matmul %30, %31, %cst_9 {dimension_numbers = #tpu.dot_dimension_numbers<[1], [0], [0], [1], [0, 0, 1, 1], [], []>} : vector<16x32xf32>, vector<32x512xf32>, vector<16x512xf32> -> vector<16x512xf32>
    %33 = vector.extract_strided_slice %32 {offsets = [0, 0], sizes = [16, 128], strides = [1, 1]} : vector<16x512xf32> to vector<16x128xf32>
    %34 = vector.shape_cast %33 : vector<16x128xf32> to vector<2x8x128xf32>
    %35 = vector.extract_strided_slice %32 {offsets = [0, 384], sizes = [16, 128], strides = [1, 1]} : vector<16x512xf32> to vector<16x128xf32>
    %36 = vector.shape_cast %35 : vector<16x128xf32> to vector<2x8x128xf32>
    %cst_10 = arith.constant 0.000000e+00 : f32
    %37 = vector.broadcast %cst_10 : f32 to vector<16x32xf32>
    %38 = vector.extract_strided_slice %32 {offsets = [0, 128], sizes = [16, 128], strides = [1, 1]} : vector<16x512xf32> to vector<16x128xf32>
    %39 = vector.shape_cast %38 : vector<16x128xf32> to vector<2x8x128xf32>
    "tpu.trace_start"() <{level = 10 : i32, message = "bqd,bkd->bqk"}> : () -> ()
    %cst_11 = arith.constant dense<0.000000e+00> : vector<2x8x8xf32>
    %40 = tpu.matmul %34, %39, %cst_11 {dimension_numbers = #tpu.dot_dimension_numbers<[2], [2], [1], [1], [0, 0, 0, 1, 1, 1], [0], [0]>} : vector<2x8x128xf32>, vector<2x8x128xf32>, vector<2x8x8xf32> -> vector<2x8x8xf32>
    "tpu.trace_stop"() : () -> ()
    %cst_12 = arith.constant dense<0xFF800000> : vector<2x8xf32>
    %41 = vector.multi_reduction <maximumf>, %40, %cst_12 [2] : vector<2x8x8xf32> to vector<2x8xf32>
    %42 = vector.shape_cast %41 : vector<2x8xf32> to vector<2x8x1xf32>
    %43 = vector.broadcast %42 : vector<2x8x1xf32> to vector<2x8x8xf32>
    %44 = arith.subf %40, %43 : vector<2x8x8xf32>
    %45 = math.exp %44 : vector<2x8x8xf32>
    %cst_13 = arith.constant dense<0.000000e+00> : vector<2x8xf32>
    %46 = vector.multi_reduction <add>, %45, %cst_13 [2] : vector<2x8x8xf32> to vector<2x8xf32>
    %47 = vector.shape_cast %46 : vector<2x8xf32> to vector<2x8x1xf32>
    %48 = tpu.reciprocal %47 {approx = true} : vector<2x8x1xf32> -> vector<2x8x1xf32>
    %49 = vector.broadcast %48 : vector<2x8x1xf32> to vector<2x8x8xf32>
    %50 = arith.mulf %45, %49 : vector<2x8x8xf32>
    "tpu.trace_start"() <{level = 10 : i32, message = "bqk,bkd->bqd"}> : () -> ()
    %cst_14 = arith.constant dense<0.000000e+00> : vector<2x8x128xf32>
    %51 = tpu.matmul %50, %36, %cst_14 {dimension_numbers = #tpu.dot_dimension_numbers<[2], [1], [1], [2], [0, 0, 0, 1, 1, 2], [0], [0]>} : vector<2x8x8xf32>, vector<2x8x128xf32>, vector<2x8x128xf32> -> vector<2x8x128xf32>
    "tpu.trace_stop"() : () -> ()
    %52 = vector.shape_cast %51 : vector<2x8x128xf32> to vector<16x128xf32>
    %c0_15 = arith.constant 0 : index
    %c0_16 = arith.constant 0 : index
    %53 = vector.load %arg2[%c0_15, %c0_16] : memref<384x32xf32, #tpu.memory_space<vmem>>, vector<128x32xf32>
    %cst_17 = arith.constant dense<0.000000e+00> : vector<16x32xf32>
    %54 = tpu.matmul %52, %53, %cst_17 {dimension_numbers = #tpu.dot_dimension_numbers<[1], [0], [0], [1], [0, 0, 1, 1], [], []>} : vector<16x128xf32>, vector<128x32xf32>, vector<16x32xf32> -> vector<16x32xf32>
    %55 = arith.addf %37, %54 : vector<16x32xf32>
    %56 = vector.extract_strided_slice %32 {offsets = [0, 256], sizes = [16, 128], strides = [1, 1]} : vector<16x512xf32> to vector<16x128xf32>
    %57 = vector.shape_cast %56 : vector<16x128xf32> to vector<2x8x128xf32>
    "tpu.trace_start"() <{level = 10 : i32, message = "bqd,bkd->bqk"}> : () -> ()
    %cst_18 = arith.constant dense<0.000000e+00> : vector<2x8x8xf32>
    %58 = tpu.matmul %34, %57, %cst_18 {dimension_numbers = #tpu.dot_dimension_numbers<[2], [2], [1], [1], [0, 0, 0, 1, 1, 1], [0], [0]>} : vector<2x8x128xf32>, vector<2x8x128xf32>, vector<2x8x8xf32> -> vector<2x8x8xf32>
    "tpu.trace_stop"() : () -> ()
    %cst_19 = arith.constant dense<0xFF800000> : vector<2x8xf32>
    %59 = vector.multi_reduction <maximumf>, %58, %cst_19 [2] : vector<2x8x8xf32> to vector<2x8xf32>
    %60 = vector.shape_cast %59 : vector<2x8xf32> to vector<2x8x1xf32>
    %61 = vector.broadcast %60 : vector<2x8x1xf32> to vector<2x8x8xf32>
    %62 = arith.subf %58, %61 : vector<2x8x8xf32>
    %63 = math.exp %62 : vector<2x8x8xf32>
    %cst_20 = arith.constant dense<0.000000e+00> : vector<2x8xf32>
    %64 = vector.multi_reduction <add>, %63, %cst_20 [2] : vector<2x8x8xf32> to vector<2x8xf32>
    %65 = vector.shape_cast %64 : vector<2x8xf32> to vector<2x8x1xf32>
    %66 = tpu.reciprocal %65 {approx = true} : vector<2x8x1xf32> -> vector<2x8x1xf32>
    %67 = vector.broadcast %66 : vector<2x8x1xf32> to vector<2x8x8xf32>
    %68 = arith.mulf %63, %67 : vector<2x8x8xf32>
    "tpu.trace_start"() <{level = 10 : i32, message = "bqk,bkd->bqd"}> : () -> ()
    %cst_21 = arith.constant dense<0.000000e+00> : vector<2x8x128xf32>
    %69 = tpu.matmul %68, %36, %cst_21 {dimension_numbers = #tpu.dot_dimension_numbers<[2], [1], [1], [2], [0, 0, 0, 1, 1, 2], [0], [0]>} : vector<2x8x8xf32>, vector<2x8x128xf32>, vector<2x8x128xf32> -> vector<2x8x128xf32>
    "tpu.trace_stop"() : () -> ()
    %70 = vector.shape_cast %69 : vector<2x8x128xf32> to vector<16x128xf32>
    %c128 = arith.constant 128 : index
    %c0_22 = arith.constant 0 : index
    %71 = vector.load %arg2[%c128, %c0_22] : memref<384x32xf32, #tpu.memory_space<vmem>>, vector<128x32xf32>
    %cst_23 = arith.constant dense<0.000000e+00> : vector<16x32xf32>
    %72 = tpu.matmul %70, %71, %cst_23 {dimension_numbers = #tpu.dot_dimension_numbers<[1], [0], [0], [1], [0, 0, 1, 1], [], []>} : vector<16x128xf32>, vector<128x32xf32>, vector<16x32xf32> -> vector<16x32xf32>
    %73 = arith.addf %55, %72 : vector<16x32xf32>
    %74 = arith.addf %0, %73 : vector<16x32xf32>
    %75 = vector.broadcast %4 : vector<1x32xf32> to vector<16x32xf32>
    %76 = arith.addf %74, %75 : vector<16x32xf32>
    %cst_24 = arith.constant dense<0.000000e+00> : vector<16xf32>
    %77 = vector.multi_reduction <add>, %76, %cst_24 [1] : vector<16x32xf32> to vector<16xf32>
    %78 = vector.shape_cast %77 : vector<16xf32> to vector<16x1xf32>
    %cst_25 = arith.constant 3.200000e+01 : f32
    %79 = vector.broadcast %cst_25 : f32 to vector<16x1xf32>
    %80 = arith.divf %78, %79 : vector<16x1xf32>
    %81 = vector.broadcast %80 : vector<16x1xf32> to vector<16x32xf32>
    %82 = arith.subf %76, %81 : vector<16x32xf32>
    %83 = arith.mulf %82, %82 : vector<16x32xf32>
    %cst_26 = arith.constant dense<0.000000e+00> : vector<16xf32>
    %84 = vector.multi_reduction <add>, %83, %cst_26 [1] : vector<16x32xf32> to vector<16xf32>
    %85 = vector.shape_cast %84 : vector<16xf32> to vector<16x1xf32>
    %cst_27 = arith.constant 3.200000e+01 : f32
    %86 = vector.broadcast %cst_27 : f32 to vector<16x1xf32>
    %87 = arith.divf %85, %86 : vector<16x1xf32>
    %88 = vector.broadcast %80 : vector<16x1xf32> to vector<16x32xf32>
    %89 = arith.subf %76, %88 : vector<16x32xf32>
    %cst_28 = arith.constant 9.99999974E-6 : f32
    %90 = vector.broadcast %cst_28 : f32 to vector<16x1xf32>
    %91 = arith.addf %87, %90 : vector<16x1xf32>
    %92 = math.rsqrt %91 : vector<16x1xf32>
    %93 = vector.broadcast %92 : vector<16x1xf32> to vector<16x32xf32>
    %94 = arith.mulf %89, %93 : vector<16x32xf32>
    %95 = vector.broadcast %5 : vector<1x32xf32> to vector<16x32xf32>
    %96 = arith.mulf %94, %95 : vector<16x32xf32>
    %97 = vector.broadcast %6 : vector<1x32xf32> to vector<16x32xf32>
    %98 = arith.addf %96, %97 : vector<16x32xf32>
    %c0_29 = arith.constant 0 : index
    %c512 = arith.constant 512 : index
    %99 = vector.load %arg1[%c0_29, %c512] : memref<32x640xf32, #tpu.memory_space<vmem>>, vector<32x128xf32>
    %cst_30 = arith.constant dense<0.000000e+00> : vector<16x128xf32>
    %100 = tpu.matmul %98, %99, %cst_30 {dimension_numbers = #tpu.dot_dimension_numbers<[1], [0], [0], [1], [0, 0, 1, 1], [], []>} : vector<16x32xf32>, vector<32x128xf32>, vector<16x128xf32> -> vector<16x128xf32>
    %101 = vector.broadcast %8 : vector<1x128xf32> to vector<16x128xf32>
    %102 = arith.addf %100, %101 : vector<16x128xf32>
    %cst_31 = arith.constant 5.000000e-01 : f32
    %103 = vector.broadcast %cst_31 : f32 to vector<16x128xf32>
    %104 = arith.mulf %103, %102 : vector<16x128xf32>
    %105 = arith.mulf %102, %102 : vector<16x128xf32>
    %106 = arith.mulf %105, %102 : vector<16x128xf32>
    %cst_32 = arith.constant 4.471500e-02 : f32
    %107 = vector.broadcast %cst_32 : f32 to vector<16x128xf32>
    %108 = arith.mulf %107, %106 : vector<16x128xf32>
    %109 = arith.addf %102, %108 : vector<16x128xf32>
    %cst_33 = arith.constant 0.797884583 : f32
    %110 = vector.broadcast %cst_33 : f32 to vector<16x128xf32>
    %111 = arith.mulf %110, %109 : vector<16x128xf32>
    %112 = math.tanh %111 : vector<16x128xf32>
    %cst_34 = arith.constant 1.000000e+00 : f32
    %113 = vector.broadcast %cst_34 : f32 to vector<16x128xf32>
    %114 = arith.addf %113, %112 : vector<16x128xf32>
    %115 = arith.mulf %104, %114 : vector<16x128xf32>
    %c256 = arith.constant 256 : index
    %c0_35 = arith.constant 0 : index
    %116 = vector.load %arg2[%c256, %c0_35] : memref<384x32xf32, #tpu.memory_space<vmem>>, vector<128x32xf32>
    %cst_36 = arith.constant dense<0.000000e+00> : vector<16x32xf32>
    %117 = tpu.matmul %115, %116, %cst_36 {dimension_numbers = #tpu.dot_dimension_numbers<[1], [0], [0], [1], [0, 0, 1, 1], [], []>} : vector<16x128xf32>, vector<128x32xf32>, vector<16x32xf32> -> vector<16x32xf32>
    %118 = vector.broadcast %7 : vector<1x32xf32> to vector<16x32xf32>
    %119 = arith.addf %117, %118 : vector<16x32xf32>
    %120 = arith.addf %76, %119 : vector<16x32xf32>
    %c0_37 = arith.constant 0 : index
    %c0_38 = arith.constant 0 : index
    %121 = vector.load %arg4[%c0_37, %c0_38] : memref<16x32xf32, #tpu.memory_space<vmem>>, vector<16x32xf32>
    tpu.vector_store %arg4[%c0_37, %c0_38], %120 {strides = array<i32>} : memref<16x32xf32, #tpu.memory_space<vmem>>, vector<16x32xf32>,
    return
  }
}

</mosaic_0001>

<bundles_post_ra>
// kernel: tpu_custom_call.1
= control target key start
LH: loop header
LB: loop body
LE: loop exit
PB: predicated region body
PF: predicated region fallthrough
CT: control target
= control target key end

     0   :  { %vm21_vm0 = vcmask 261120   ;;  %s1065_s0 = inlined_call_operand.vmem [shape: f32[16,32], index: 0, kind: input, shape index: {}]   ;;  %s1066_s1 = inlined_call_operand.vmem [shape: f32[32,640], index: 1, kind: input, shape index: {}]   ;;  %s1067_s2 = inlined_call_operand.vmem [shape: f32[384,32], index: 2, kind: input, shape index: {}]   ;;  %s1068_s3 = inlined_call_operand.vmem [shape: f32[8,128], index: 3, kind: input, shape index: {}]   ;;  %s1069_s4 = inlined_call_operand.hbm [shape: f32[16,32], index: 4, kind: output, shape index: {}]  }
   0x1   :  { %v767_v0 = vld [vmem:[%s1065_s0] sm:$0xff] }
   0x2   :  { %9 = vsyncpa [#allocation3], 0  ;;  %v22_v1 = vsel %vm21_vm0, %v767_v0, 0.0  ;;  %v774_v2 = vld [vmem:[%s1065_s0 + $0x8] sm:$0xff]  ;;  %v735_v4 = vmov 32.0   ;;  %v91_v21 = vld [vmem:[%s1066_s1 + $0x78] sm:$0xff] }
   0x3   :  { %23 = vadd.xlane.f32.xlu0 %v22_v1  ;;  %v25_v3 = vsel %vm21_vm0, %v774_v2, 0.0  ;;  %679 = vrcp.f32 %v735_v4  ;;  %v92_v22 = vld [vmem:[%s1066_s1 + $0x80] sm:$0xff]  ;;  %v94_v23 = vld [vmem:[%s1066_s1 + $0x90] sm:$0xff]  ;;  %113 = vmatpush.msra.mxu2 %v91_v21  ;;  %v88_v25 = vld [vmem:[%s1066_s1 + $0x58] sm:$0xff]  ;;  %vm233_vm8 = vcmask 64512   ;;  %s737_s19 = smov 128  }
   0x4   :  { %136 = vmatpush.msra.mxu0 %v92_v22  ;;  %182 = vmatpush.msra.mxu3 %v94_v23  ;;  %v87_v24 = vld [vmem:[%s1066_s1 + $0x50] sm:$0xff]  ;;  %v90_v26 = vld [vmem:[%s1066_s1 + $0x68] sm:$0xff]  ;;  %v86_v29 = vld [vmem:[%s1066_s1 + $0x40] sm:$0xff]  ;;  %s738_s20 = smov 8  }
   0x5   :  { %671 = vmatpush.msra.mxu1 %v92_v22  ;;  %114 = vmatpush.msra.mxu2 %v87_v24  ;;  %v83_v27 = vld [vmem:[%s1066_s1 + $0x28] sm:$0xff]  ;;  %v84_v28 = vld [vmem:[%s1066_s1 + $0x30] sm:$0xff]  ;;  %v79_v30 = vld [vmem:[%s1066_s1] sm:$0xff] }
   0x6   :  { %137 = vmatpush.msra.mxu0 %v88_v25  ;;  %183 = vmatpush.msra.mxu3 %v90_v26  ;;  %v80_v31 = vld [vmem:[%s1066_s1 + $0x8] sm:$0xff]  ;;  %v82_v32 = vld [vmem:[%s1066_s1 + $0x18] sm:$0xff]  ;;  %v89_v37 = vld [vmem:[%s1066_s1 + $0x60] sm:$0xff] }
   0x7   :  { %672 = vmatpush.msra.mxu1 %v88_v25  ;;  %115 = vmatpush.msra.mxu2 %v83_v27  ;;  %v93_v33 = vld [vmem:[%s1066_s1 + $0x88] sm:$0xff]  ;;  %v85_v38 = vld [vmem:[%s1066_s1 + $0x38] sm:$0xff]  ;;  %v81_v40 = vld [vmem:[%s1066_s1 + $0x10] sm:$0xff] }
   0x8   :  { %138 = vmatpush.msra.mxu0 %v84_v28  ;;  %184 = vmatpush.msra.mxu3 %v86_v29  ;;  %v847_v48 = vld [vmem:[%s1068_s3] sm:$0xff] }
   0x9   :  { %v680_v5 = vpop.eup %679  ;;  %673 = vmatpush.msra.mxu1 %v84_v28  ;;  %116 = vmatpush.msra.mxu2 %v79_v30  ;;  %v73_v52 = vperm.slane %v847_v48, 0  ;;  %v76_v56 = vperm.slane %v847_v48, 1 }
   0xa   :  { %v29_v6 = vmul.f32 32.0, %v680_v5  ;;  %vm33_vm1 = vweird.f32 %v680_v5  ;;  %139 = vmatpush.msra.mxu0 %v80_v31  ;;  %185 = vmatpush.msra.mxu3 %v82_v32 }
   0xb   :  { %26 = vadd.xlane.f32.xlu0 %v25_v3  ;;  %674 = vmatpush.msra.mxu1 %v80_v31 }
   0xc   :  { %v30_v7 = vsub.f32 1.0, %v29_v6  ;;  %159 = vmatpush.msrb.mxu2 %v93_v33 }
   0xe   :  { %v31_v8 = vmul.f32 %v680_v5, %v30_v7  ;;  %160 = vmatpush.msrb.mxu2 %v89_v37 }
  0x10   :  { %v32_v9 = vadd.f32 %v680_v5, %v31_v8  ;;  %161 = vmatpush.msrb.mxu2 %v85_v38 }
  0x12   :  { %v778_v10 = vsel %vm33_vm1, %v680_v5, %v32_v9  ;;  %162 = vmatpush.msrb.mxu2 %v81_v40 }
  0x76   :  { %v24_v11 = vpop.xlane.xlu0 %23 }
  0x77   :  { %v35_v12 = vmul.f32 %v778_v10, %v24_v11 }
  0x79   :  { %v782_v13 = vsub.f32 %v767_v0, %v35_v12 }
  0x7b   :  { %v39_v14 = vmul.f32 %v782_v13, %v782_v13 }
  0x7d   :  { %v41_v15 = vsel %vm21_vm0, %v39_v14, 0.0 }
  0x7e   :  { %42 = vadd.xlane.f32.xlu1 %v41_v15  ;;  %v27_v16 = vpop.xlane.xlu0 %26 }
  0x7f   :  { %v36_v17 = vmul.f32 %v778_v10, %v27_v16 }
  0x81   :  { %v789_v18 = vsub.f32 %v774_v2, %v36_v17 }
  0x83   :  { %v40_v19 = vmul.f32 %v789_v18, %v789_v18 }
  0x85   :  { %v44_v20 = vsel %vm21_vm0, %v40_v19, 0.0 }
  0x86   :  { %45 = vadd.xlane.f32.xlu1 %v44_v20 }
  0xf1   :  { %v43_v34 = vpop.xlane.xlu1 %42 }
  0xf2   :  { %v47_v35 = vmul.f32 %v43_v34, %v778_v10 }
  0xf4   :  { %v49_v36 = vadd.f32 1e-05, %v47_v35 }
  0xf6   :  { %681 = vrsqrt.f32 %v49_v36  ;;  %vm57_vm3 = vweird.f32 %v49_v36 }
  0xf9   :  { %v46_v39 = vpop.xlane.xlu1 %45 }
  0xfa   :  { %v48_v41 = vmul.f32 %v46_v39, %v778_v10 }
  0xfc   :  { %v682_v42 = vpop.eup %681  ;;  %v50_v43 = vadd.f32 1e-05, %v48_v41 }
  0xfd   :  { %v52_v44 = vmul.f32 %v682_v42, %v49_v36  ;;  %vm58_vm2 = vweird.f32 %v682_v42 }
  0xfe   :  { %683 = vrsqrt.f32 %v50_v43  ;;  %vm59_vm4 = vmor %vm57_vm3, %vm58_vm2  ;;  %vm67_vm6 = vweird.f32 %v50_v43 }
  0xff   :  { %v53_v45 = vmul.f32 %v682_v42, %v52_v44 }
 0x101   :  { %v54_v46 = vmul.f32 0.5, %v53_v45  ;;  %v315_v45 = vld [vmem:[%s1067_s2 + $0x68] sm:$0xff] }
 0x103   :  { %v55_v47 = vsub.f32 1.5, %v54_v46 }
 0x104   :  { %v684_v49 = vpop.eup %683 }
 0x105   :  { %v56_v50 = vmul.f32 %v682_v42, %v55_v47  ;;  %v62_v51 = vmul.f32 %v684_v49, %v50_v43  ;;  %vm68_vm5 = vweird.f32 %v684_v49  ;;  %v316_v43 = vld [vmem:[%s1067_s2 + $0x70] sm:$0xff] }
 0x106   :  { %vm69_vm7 = vmor %vm67_vm6, %vm68_vm5 }
 0x107   :  { %v60_v53 = vsel %vm59_vm4, %v682_v42, %v56_v50  ;;  %v63_v54 = vmul.f32 %v684_v49, %v62_v51  ;;  %v317_v42 = vld [vmem:[%s1067_s2 + $0x78] sm:$0xff]  ;;  %v314_v50 = vld [vmem:[%s1067_s2 + $0x60] sm:$0xff]  ;;  %v440_v51 = vld [vmem:[%s1067_s2 + $0xf0] sm:$0xff] }
 0x108   :  { %v71_v55 = vmul.f32 %v60_v53, %v782_v13  ;;  %v313_v53 = vld [vmem:[%s1067_s2 + $0x58] sm:$0xff] }
 0x109   :  { %v64_v57 = vmul.f32 0.5, %v63_v54  ;;  %v438_v54 = vld [vmem:[%s1067_s2 + $0xe0] sm:$0xff] }
 0x10a   :  { %v74_v58 = vmul.f32 %v73_v52, %v71_v55  ;;  %v312_v55 = vld [vmem:[%s1067_s2 + $0x50] sm:$0xff] }
 0x10b   :  { %v65_v59 = vsub.f32 1.5, %v64_v57 }
 0x10c   :  { %v77_v60 = vadd.f32 %v76_v56, %v74_v58  ;;  %v311_v58 = vld [vmem:[%s1067_s2 + $0x48] sm:$0xff] }
 0x10d   :  { %v66_v61 = vmul.f32 %v684_v49, %v65_v59 }
 0x10e   :  { %657 = vmatmul.msk.f32.vlgmr.msra.gmra.mxu2 %vm21_vm0, %v77_v60  ;;  %659 = vmatmul.msk.f32.vlgmr.msra.gmra.mxu0 %vm21_vm0, %v77_v60 }
 0x10f   :  { %v70_v62 = vsel %vm69_vm7, %v684_v49, %v66_v61  ;;  %663 = vmatmul.msk.f32.vlgmr.msra.gmra.mxu3 %vm21_vm0, %v77_v60  ;;  %v441_v49 = vld [vmem:[%s1067_s2 + $0xf8] sm:$0xff]  ;;  %v310_v61 = vld [vmem:[%s1067_s2 + $0x40] sm:$0xff] }
 0x110   :  { %v72_v63 = vmul.f32 %v70_v62, %v789_v18 }
 0x112   :  { %v75_v1 = vmul.f32 %v73_v52, %v72_v63  ;;  %v439_v52 = vld [vmem:[%s1067_s2 + $0xe8] sm:$0xff]  ;;  %v309_v63 = vld [vmem:[%s1067_s2 + $0x38] sm:$0xff] }
 0x114   :  { %v78_v3 = vadd.f32 %v76_v56, %v75_v1  ;;  %v437_v56 = vld [vmem:[%s1067_s2 + $0xd8] sm:$0xff]  ;;  %v308_v1 = vld [vmem:[%s1067_s2 + $0x30] sm:$0xff] }
 0x116   :  { %658 = vmatmul.msk.f32.gmra.mxu2 %vm21_vm0, %v78_v3  ;;  %660 = vmatmul.msk.f32.vlgmr.msra.gmra.mxu1 %vm21_vm0, %v78_v3 }
 0x117   :  { %664 = vmatmul.msk.f32.gmra.mxu3 %vm21_vm0, %v78_v3 }
 0x11e   :  { %661 = vmatmul.msk.f32.vlgmr.msrb.gmra.mxu2 %vm21_vm0, %v77_v60  ;;  %v436_v60 = vld [vmem:[%s1067_s2 + $0xd0] sm:$0xff] }
 0x126   :  { %662 = vmatmul.msk.f32.gmra.mxu2 %vm21_vm0, %v78_v3  ;;  %v307_v3 = vld [vmem:[%s1067_s2 + $0x28] sm:$0xff] }
 0x18b   :  { %v141_v4 = vpop.f32.mrf.mxu0 }
 0x18c   :  { %208 = vmatpush.xpose.msrb.mxu0 %v141_v4  ;;  %v306_v4 = vld [vmem:[%s1067_s2 + $0x20] sm:$0xff] }
 0x191   :  { %v118_v5 = vpop.f32.mrf.mxu2 }
 0x192   :  { %v187_v6 = vpop.f32.mrf.mxu3  ;;  %209 = vmatmul.f32.vlgmr.msrb.gmra.mxu0 %v118_v5 }
 0x193   :  { %274 = vmatpush.msra.mxu2 %v187_v6  ;;  %v144_v7 = vpop.f32.mrf.mxu1 }
 0x194   :  { %228 = vmatpush.xpose.msrb.mxu1 %v144_v7 }
 0x195   :  { %398 = vmatpush.msrb.mxu2 %v187_v6 }
 0x199   :  { %v121_v8 = vpop.f32.mrf.mxu2 }
 0x19a   :  { %v190_v9 = vpop.f32.mrf.mxu3  ;;  %229 = vmatmul.f32.vlgmr.msrb.gmra.mxu1 %v121_v8 }
 0x19b   :  { %297 = vmatpush.msrb.mxu3 %v190_v9 }
 0x19d   :  { %421 = vmatpush.msra.mxu3 %v190_v9  ;;  %v304_v9 = vld [vmem:[%s1067_s2 + $0x10] sm:$0xff] }
 0x1a1   :  { %v164_v11 = vpop.f32.mrf.mxu2 }
 0x1a2   :  { %333 = vmatpush.xpose.msra.mxu0 %v164_v11  ;;  %v303_v11 = vld [vmem:[%s1067_s2 + $0x8] sm:$0xff] }
 0x1a5   :  { %334 = vmatmul.f32.vlgmr.msra.gmra.mxu0 %v118_v5 }
 0x1a6   :  { %442 = vmatpush.msrb.mxu0 %v441_v49 }
 0x1a8   :  { %443 = vmatpush.msrb.mxu0 %v440_v51  ;;  %v546_v51 = vld [vmem:[%s1066_s1 + $0x98] sm:$0xff] }
 0x1a9   :  { %v167_v12 = vpop.f32.mrf.mxu2 }
 0x1aa   :  { %353 = vmatpush.xpose.msra.mxu1 %v167_v12  ;;  %444 = vmatpush.msrb.mxu0 %v439_v52  ;;  %v545_v52 = vld [vmem:[%s1066_s1 + $0x70] sm:$0xff] }
 0x1ac   :  { %445 = vmatpush.msrb.mxu0 %v438_v54  ;;  %v543_v54 = vld [vmem:[%s1066_s1 + $0x20] sm:$0xff] }
 0x1ad   :  { %354 = vmatmul.f32.vlgmr.msra.gmra.mxu1 %v121_v8  ;;  %v305_v8 = vld [vmem:[%s1067_s2 + $0x18] sm:$0xff] }
 0x1ae   :  { %465 = vmatpush.msrb.mxu1 %v317_v42  ;;  %446 = vmatpush.msrb.mxu0 %v437_v56 }
 0x1b0   :  { %466 = vmatpush.msrb.mxu1 %v316_v43  ;;  %447 = vmatpush.msrb.mxu0 %v436_v60  ;;  %v608_v60 = vld [vmem:[%s1067_s2 + $0x168] sm:$0xff] }
 0x1b2   :  { %467 = vmatpush.msrb.mxu1 %v315_v45 }
 0x1b4   :  { %468 = vmatpush.msrb.mxu1 %v314_v50 }
 0x1b6   :  { %469 = vmatpush.msrb.mxu1 %v313_v53  ;;  %v544_v53 = vld [vmem:[%s1066_s1 + $0x48] sm:$0xff]  ;;  %s645_s1 = sshll.u32 %s1069_s4, 4  ;;  %s646_s1 = int_to_ptr.hbm [resolvable:$true] %s645_s1 }
 0x1b8   :  { %470 = vmatpush.msrb.mxu1 %v312_v55 }
 0x1ba   :  { %471 = vmatpush.msrb.mxu1 %v311_v58  ;;  %v610_v58 = vld [vmem:[%s1067_s2 + $0x178] sm:$0xff] }
 0x1bc   :  { %472 = vmatpush.msrb.mxu1 %v310_v61 }
 0x1be   :  { %473 = vmatpush.msrb.mxu1 %v309_v63  ;;  %v607_v63 = vld [vmem:[%s1067_s2 + $0x160] sm:$0xff] }
 0x1c0   :  { %474 = vmatpush.msrb.mxu1 %v308_v1 }
 0x1c2   :  { %475 = vmatpush.msrb.mxu1 %v307_v3 }
 0x1c4   :  { %476 = vmatpush.msrb.mxu1 %v306_v4 }
 0x1c6   :  { %477 = vmatpush.msrb.mxu1 %v305_v8 }
 0x1c8   :  { %478 = vmatpush.msrb.mxu1 %v304_v9 }
 0x1ca   :  { %479 = vmatpush.msrb.mxu1 %v303_v11 }
 0x20f   :  { %v210_v13 = vpop.f32.mrf.mxu0 }
 0x210   :  { %v234_v14 = vsel %vm233_vm8, %v210_v13, -inf }
 0x211   :  { %235 = vmax.xlane.f32.xlu2 %v234_v14  ;;  %v302_v14 = vld [vmem:[%s1067_s2] sm:$0xff] }
 0x212   :  { %480 = vmatpush.msrb.mxu1 %v302_v14 }
 0x217   :  { %v230_v15 = vpop.f32.mrf.mxu1 }
 0x218   :  { %v237_v16 = vsel %vm233_vm8, %v230_v15, -inf }
 0x219   :  { %238 = vmax.xlane.f32.xlu2 %v237_v16  ;;  %v434_v16 = vld [vmem:[%s1067_s2 + $0xc0] sm:$0xff] }
 0x222   :  { %v335_v17 = vpop.f32.mrf.mxu0 }
 0x223   :  { %v358_v18 = vsel %vm233_vm8, %v335_v17, -inf }
 0x224   :  { %359 = vmax.xlane.f32.xlu0 %v358_v18  ;;  %v432_v18 = vld [vmem:[%s1067_s2 + $0xb0] sm:$0xff] }
 0x22a   :  { %v355_v19 = vpop.f32.mrf.mxu1 }
 0x22b   :  { %v361_v20 = vsel %vm233_vm8, %v355_v19, -inf }
 0x22c   :  { %362 = vmax.xlane.f32.xlu1 %v361_v20  ;;  %v430_v20 = vld [vmem:[%s1067_s2 + $0xa0] sm:$0xff] }
 0x284   :  { %v236_v21 = vpop.xlane.xlu2 %235 }
 0x285   :  { %v240_v22 = vsub.f32 %v210_v13, %v236_v21  ;;  %v429_v21 = vld [vmem:[%s1067_s2 + $0x98] sm:$0xff] }
 0x287   :  { %v242_v23 = vmul.f32 1.442695, %v240_v22  ;;  %v428_v22 = vld [vmem:[%s1067_s2 + $0x90] sm:$0xff] }
 0x289   :  { %685 = vpow2.f32 %v242_v23  ;;  %v427_v23 = vld [vmem:[%s1067_s2 + $0x88] sm:$0xff] }
 0x28c   :  { %v239_v24 = vpop.xlane.xlu2 %238 }
 0x28d   :  { %v241_v25 = vsub.f32 %v230_v15, %v239_v24  ;;  %v435_v15 = vld [vmem:[%s1067_s2 + $0xc8] sm:$0xff]  ;;  %v426_v24 = vld [vmem:[%s1067_s2 + $0x80] sm:$0xff] }
 0x28e   :  { %448 = vmatpush.msrb.mxu0 %v435_v15  ;;  %v540_v15 = vperm.slane %v847_v48, 4 }
 0x28f   :  { %v686_v26 = vpop.eup %685  ;;  %v244_v27 = vmul.f32 1.442695, %v241_v25 }
 0x290   :  { %v246_v28 = vsel %vm233_vm8, %v686_v26, 0.0  ;;  %449 = vmatpush.msrb.mxu0 %v434_v16 }
 0x291   :  { %687 = vpow2.f32 %v244_v27  ;;  %247 = vadd.xlane.f32.xlu2 %v246_v28 }
 0x297   :  { %v688_v29 = vpop.eup %687  ;;  %v360_v30 = vpop.xlane.xlu0 %359 }
 0x298   :  { %v364_v31 = vsub.f32 %v335_v17, %v360_v30  ;;  %v249_v32 = vsel %vm233_vm8, %v688_v29, 0.0  ;;  %v433_v17 = vld [vmem:[%s1067_s2 + $0xb8] sm:$0xff] }
 0x299   :  { %250 = vadd.xlane.f32.xlu0 %v249_v32  ;;  %450 = vmatpush.msrb.mxu0 %v433_v17  ;;  %v490_v32 = vperm.slane %v847_v48, 2 }
 0x29a   :  { %v366_v33 = vmul.f32 1.442695, %v364_v31 }
 0x29b   :  { %451 = vmatpush.msrb.mxu0 %v432_v18 }
 0x29c   :  { %689 = vpow2.f32 %v366_v33 }
 0x29f   :  { %v363_v34 = vpop.xlane.xlu1 %362 }
 0x2a0   :  { %v365_v35 = vsub.f32 %v355_v19, %v363_v34  ;;  %v431_v19 = vld [vmem:[%s1067_s2 + $0xa8] sm:$0xff] }
 0x2a1   :  { %452 = vmatpush.msrb.mxu0 %v431_v19 }
 0x2a2   :  { %v690_v36 = vpop.eup %689  ;;  %v368_v37 = vmul.f32 1.442695, %v365_v35 }
 0x2a3   :  { %v370_v38 = vsel %vm233_vm8, %v690_v36, 0.0  ;;  %453 = vmatpush.msrb.mxu0 %v430_v20 }
 0x2a4   :  { %691 = vpow2.f32 %v368_v37  ;;  %371 = vadd.xlane.f32.xlu1 %v370_v38 }
 0x2a5   :  { %454 = vmatpush.msrb.mxu0 %v429_v21 }
 0x2a7   :  { %455 = vmatpush.msrb.mxu0 %v428_v22 }
 0x2a9   :  { %456 = vmatpush.msrb.mxu0 %v427_v23 }
 0x2aa   :  { %v868_v39 = vpop.eup %691 }
 0x2ab   :  { %v373_v40 = vsel %vm233_vm8, %v868_v39, 0.0  ;;  %457 = vmatpush.msrb.mxu0 %v426_v24 }
 0x2ac   :  { %374 = vadd.xlane.f32.xlu2 %v373_v40 }
 0x304   :  { %v248_v41 = vpop.xlane.xlu2 %247 }
 0x305   :  { %693 = vrcp.f32 %v248_v41 }
 0x30b   :  { %v694_v44 = vpop.eup %693 }
 0x30c   :  { %v254_v46 = vmul.f32 %v694_v44, %v686_v26  ;;  %v251_v47 = vpop.xlane.xlu0 %250 }
 0x30d   :  { %695 = vrcp.f32 %v251_v47 }
 0x30e   :  { %665 = vmatmul.msk.f32.vlgmr.msra.gmra.mxu2 %vm233_vm8, %v254_v46 }
 0x30f   :  { %566 = vmatpush.msra.mxu2 %v546_v51 }
 0x311   :  { %567 = vmatpush.msra.mxu2 %v545_v52 }
 0x313   :  { %v696_v57 = vpop.eup %695  ;;  %568 = vmatpush.msra.mxu2 %v544_v53 }
 0x314   :  { %v255_v59 = vmul.f32 %v696_v57, %v688_v29 }
 0x315   :  { %569 = vmatpush.msra.mxu2 %v543_v54 }
 0x316   :  { %666 = vmatmul.msk.f32.vlgmr.msrb.gmra.mxu3 %vm233_vm8, %v255_v59  ;;  %v609_v59 = vld [vmem:[%s1067_s2 + $0x170] sm:$0xff] }
 0x317   :  { %v372_v62 = vpop.xlane.xlu1 %371  ;;  %612 = vmatpush.msrb.mxu3 %v610_v58 }
 0x318   :  { %697 = vrcp.f32 %v372_v62 }
 0x319   :  { %613 = vmatpush.msrb.mxu3 %v609_v59 }
 0x31b   :  { %614 = vmatpush.msrb.mxu3 %v608_v60 }
 0x31d   :  { %615 = vmatpush.msrb.mxu3 %v607_v63 }
 0x31e   :  { %v698_v5 = vpop.eup %697 }
 0x31f   :  { %v378_v6 = vmul.f32 %v698_v5, %v690_v36  ;;  %v375_v7 = vpop.xlane.xlu2 %374 }
 0x320   :  { %699 = vrcp.f32 %v375_v7 }
 0x321   :  { %667 = vmatmul.msk.f32.vlgmr.msrb.gmra.mxu2 %vm233_vm8, %v378_v6 }
 0x326   :  { %v700_v12 = vpop.eup %699 }
 0x327   :  { %v379_v13 = vmul.f32 %v700_v12, %v868_v39 }
 0x329   :  { %668 = vmatmul.msk.f32.vlgmr.msra.gmra.mxu3 %vm233_vm8, %v379_v13 }
 0x391   :  { %v276_v25 = vpop.f32.mrf.mxu2 }
 0x392   :  { %481 = vmatmul.f32.vlgmr.msrb.gmra.mxu1 %v276_v25  ;;  %v606_v25 = vld [vmem:[%s1067_s2 + $0x158] sm:$0xff] }
 0x393   :  { %616 = vmatpush.msrb.mxu3 %v606_v25 }
 0x399   :  { %v299_v26 = vpop.f32.mrf.mxu3 }
 0x39a   :  { %484 = vmatmul.f32.gmra.mxu1 %v299_v26  ;;  %v605_v26 = vld [vmem:[%s1067_s2 + $0x150] sm:$0xff] }
 0x39b   :  { %617 = vmatpush.msrb.mxu3 %v605_v26 }
 0x3a4   :  { %v400_v27 = vpop.f32.mrf.mxu2 }
 0x3a5   :  { %458 = vmatmul.f32.vlgmr.msrb.gmra.mxu0 %v400_v27  ;;  %v604_v27 = vld [vmem:[%s1067_s2 + $0x148] sm:$0xff] }
 0x3a6   :  { %618 = vmatpush.msrb.mxu3 %v604_v27 }
 0x3ac   :  { %v423_v28 = vpop.f32.mrf.mxu3 }
 0x3ad   :  { %461 = vmatmul.f32.gmra.mxu0 %v423_v28  ;;  %v603_v28 = vld [vmem:[%s1067_s2 + $0x140] sm:$0xff] }
 0x3ae   :  { %619 = vmatpush.msrb.mxu3 %v603_v28 }
 0x40f   :  { %v482_v29 = vpop.f32.mrf.mxu1 }
 0x417   :  { %v485_v36 = vpop.f32.mrf.mxu1 }
 0x422   :  { %v459_v30 = vpop.f32.mrf.mxu0 }
 0x423   :  { %v483_v31 = vadd.f32 %v482_v29, %v459_v30  ;;  %v602_v29 = vld [vmem:[%s1067_s2 + $0x138] sm:$0xff]  ;;  %v601_v30 = vld [vmem:[%s1067_s2 + $0x130] sm:$0xff] }
 0x424   :  { %620 = vmatpush.msrb.mxu3 %v602_v29 }
 0x425   :  { %v488_v33 = vadd.f32 %v483_v31, %v767_v0  ;;  %v600_v31 = vld [vmem:[%s1067_s2 + $0x128] sm:$0xff] }
 0x426   :  { %621 = vmatpush.msrb.mxu3 %v601_v30 }
 0x427   :  { %v975_v34 = vadd.f32 %v490_v32, %v488_v33  ;;  %v598_v33 = vld [vmem:[%s1067_s2 + $0x118] sm:$0xff] }
 0x428   :  { %622 = vmatpush.msrb.mxu3 %v600_v31 }
 0x429   :  { %v493_v35 = vsel %vm21_vm0, %v975_v34, 0.0 }
 0x42a   :  { %494 = vadd.xlane.f32.xlu0 %v493_v35  ;;  %v462_v37 = vpop.f32.mrf.mxu0  ;;  %v597_v35 = vld [vmem:[%s1067_s2 + $0x110] sm:$0xff] }
 0x42b   :  { %v486_v38 = vadd.f32 %v485_v36, %v462_v37  ;;  %v596_v36 = vld [vmem:[%s1067_s2 + $0x108] sm:$0xff]  ;;  %v595_v37 = vld [vmem:[%s1067_s2 + $0x100] sm:$0xff] }
 0x42d   :  { %v489_v39 = vadd.f32 %v486_v38, %v774_v2  ;;  %v547_v38 = vperm.slane %v847_v48, 6 }
 0x42f   :  { %v980_v40 = vadd.f32 %v490_v32, %v489_v39  ;;  %v599_v32 = vld [vmem:[%s1067_s2 + $0x120] sm:$0xff]  ;;  %s736_s2 = smov [#allocation2]  }
 0x430   :  { %623 = vmatpush.msrb.mxu3 %v599_v32  ;;  %s643_s17 = sshll.u32 %s736_s2, 4  ;;  %s644_s17 = int_to_ptr.vmem [resolvable:$true] %s643_s17 }
 0x431   :  { %v496_v41 = vsel %vm21_vm0, %v980_v40, 0.0 }
 0x432   :  { %497 = vadd.xlane.f32.xlu1 %v496_v41  ;;  %624 = vmatpush.msrb.mxu3 %v598_v33 }
 0x434   :  { %625 = vmatpush.msrb.mxu3 %v597_v35 }
 0x436   :  { %626 = vmatpush.msrb.mxu3 %v596_v36 }
 0x438   :  { %627 = vmatpush.msrb.mxu3 %v595_v37 }
 0x49d   :  { %v495_v42 = vpop.xlane.xlu0 %494 }
 0x49e   :  { %v499_v0 = vmul.f32 %v495_v42, %v778_v10 }
 0x4a0   :  { %v501_v43 = vsub.f32 %v975_v34, %v499_v0 }
 0x4a2   :  { %v503_v44 = vmul.f32 %v501_v43, %v501_v43 }
 0x4a4   :  { %v505_v45 = vsel %vm21_vm0, %v503_v44, 0.0 }
 0x4a5   :  { %506 = vadd.xlane.f32.xlu2 %v505_v45  ;;  %v498_v46 = vpop.xlane.xlu1 %497 }
 0x4a6   :  { %v500_v47 = vmul.f32 %v498_v46, %v778_v10 }
 0x4a8   :  { %v502_v2 = vsub.f32 %v980_v40, %v500_v47 }
 0x4aa   :  { %v504_v49 = vmul.f32 %v502_v2, %v502_v2 }
 0x4ac   :  { %v508_v50 = vsel %vm21_vm0, %v504_v49, 0.0 }
 0x4ad   :  { %509 = vadd.xlane.f32.xlu0 %v508_v50 }
 0x518   :  { %v507_v55 = vpop.xlane.xlu2 %506 }
 0x519   :  { %v511_v56 = vmul.f32 %v507_v55, %v778_v10 }
 0x51b   :  { %v513_v57 = vadd.f32 1e-05, %v511_v56 }
 0x51d   :  { %701 = vrsqrt.f32 %v513_v57  ;;  %vm521_vm10 = vweird.f32 %v513_v57 }
 0x520   :  { %v510_v61 = vpop.xlane.xlu0 %509 }
 0x521   :  { %v512_v62 = vmul.f32 %v510_v61, %v778_v10  ;;  %v537_v10 = vperm.slane %v847_v48, 3  ;;  %v611_v61 = vperm.slane %v847_v48, 5 }
 0x523   :  { %v702_v1 = vpop.eup %701  ;;  %v514_v3 = vadd.f32 1e-05, %v512_v62 }
 0x524   :  { %v516_v4 = vmul.f32 %v702_v1, %v513_v57  ;;  %vm522_vm9 = vweird.f32 %v702_v1 }
 0x525   :  { %703 = vrsqrt.f32 %v514_v3  ;;  %vm523_vm11 = vmor %vm521_vm10, %vm522_vm9  ;;  %vm531_vm13 = vweird.f32 %v514_v3 }
 0x526   :  { %v517_v5 = vmul.f32 %v702_v1, %v516_v4 }
 0x528   :  { %v518_v6 = vmul.f32 0.5, %v517_v5 }
 0x52a   :  { %v519_v7 = vsub.f32 1.5, %v518_v6 }
 0x52b   :  { %v704_v8 = vpop.eup %703 }
 0x52c   :  { %v520_v9 = vmul.f32 %v702_v1, %v519_v7  ;;  %v526_v11 = vmul.f32 %v704_v8, %v514_v3  ;;  %vm532_vm12 = vweird.f32 %v704_v8 }
 0x52d   :  { %vm533_vm14 = vmor %vm531_vm13, %vm532_vm12 }
 0x52e   :  { %v524_v12 = vsel %vm523_vm11, %v702_v1, %v520_v9  ;;  %v527_v13 = vmul.f32 %v704_v8, %v526_v11 }
 0x52f   :  { %v535_v14 = vmul.f32 %v524_v12, %v501_v43 }
 0x530   :  { %v528_v16 = vmul.f32 0.5, %v527_v13 }
 0x531   :  { %v538_v17 = vmul.f32 %v537_v10, %v535_v14 }
 0x532   :  { %v529_v18 = vsub.f32 1.5, %v528_v16 }
 0x533   :  { %v541_v19 = vadd.f32 %v540_v15, %v538_v17 }
 0x534   :  { %v530_v20 = vmul.f32 %v704_v8, %v529_v18 }
 0x535   :  { %669 = vmatmul.msk.f32.vlgmr.msra.gmra.mxu2 %vm21_vm0, %v541_v19 }
 0x536   :  { %v534_v21 = vsel %vm533_vm14, %v704_v8, %v530_v20 }
 0x537   :  { %v536_v22 = vmul.f32 %v534_v21, %v502_v2 }
 0x539   :  { %v539_v23 = vmul.f32 %v537_v10, %v536_v22 }
 0x53b   :  { %v542_v24 = vadd.f32 %v540_v15, %v539_v23 }
 0x53d   :  { %670 = vmatmul.msk.f32.gmra.mxu2 %vm21_vm0, %v542_v24 }
 0x5b8   :  { %v571_v39 = vpop.f32.mrf.mxu2 }
 0x5b9   :  { %v572_v41 = vadd.f32 %v571_v39, %v547_v38 }
 0x5bb   :  { %v579_v42 = vmul.f32 %v572_v41, %v572_v41  ;;  %v577_v54 = vmul.f32 0.5, %v572_v41 }
 0x5bd   :  { %v581_v0 = vmul.f32 %v579_v42, %v572_v41 }
 0x5bf   :  { %v583_v43 = vmul.f32 0.044715, %v581_v0 }
 0x5c0   :  { %v574_v44 = vpop.f32.mrf.mxu2 }
 0x5c1   :  { %v585_v45 = vadd.f32 %v583_v43, %v572_v41  ;;  %v575_v46 = vadd.f32 %v574_v44, %v547_v38 }
 0x5c3   :  { %v587_v47 = vmul.f32 0.7978846, %v585_v45  ;;  %v580_v2 = vmul.f32 %v575_v46, %v575_v46  ;;  %v578_v58 = vmul.f32 0.5, %v575_v46 }
 0x5c5   :  { %705 = vtanh.f32 %v587_v47  ;;  %v582_v49 = vmul.f32 %v580_v2, %v575_v46 }
 0x5c7   :  { %v584_v50 = vmul.f32 0.044715, %v582_v49 }
 0x5c9   :  { %v586_v51 = vadd.f32 %v584_v50, %v575_v46 }
 0x5cb   :  { %v706_v52 = vpop.eup %705  ;;  %v588_v53 = vmul.f32 0.7978846, %v586_v51 }
 0x5cc   :  { %v591_v55 = vadd.f32 1.0, %v706_v52 }
 0x5cd   :  { %707 = vtanh.f32 %v588_v53 }
 0x5ce   :  { %v593_v56 = vmul.f32 %v591_v55, %v577_v54 }
 0x5d0   :  { %628 = vmatmul.f32.vlgmr.msrb.gmra.mxu3 %v593_v56 }
 0x5d3   :  { %v708_v57 = vpop.eup %707 }
 0x5d4   :  { %v592_v59 = vadd.f32 1.0, %v708_v57 }
 0x5d6   :  { %v594_v60 = vmul.f32 %v592_v59, %v578_v58 }
 0x5d8   :  { %631 = vmatmul.f32.gmra.mxu3 %v594_v60 }
 0x653   :  { %v629_v62 = vpop.f32.mrf.mxu3 }
 0x654   :  { %v630_v63 = vadd.f32 %v629_v62, %v611_v61 }
 0x656   :  { %v635_v1 = vadd.f32 %v630_v63, %v975_v34 }
 0x658   :  { %637 = vst.msk [vmem:[#allocation2] sm:$0xff] %vm21_vm0, %v635_v1 }
 0x65b   :  { %v632_v3 = vpop.f32.mrf.mxu3 }
 0x65c   :  { %v633_v4 = vadd.f32 %v632_v3, %v611_v61 }
 0x65e   :  { %v636_v5 = vadd.f32 %v633_v4, %v980_v40 }
 0x660   :  { %638 = vst.msk [vmem:[#allocation2 + $0x8] sm:$0xff] %vm21_vm0, %v636_v5 }
 0x661   :  { %651 = dma.vmem_to_hbm [thread:$0]  %s644_s17, 256, %s646_s1, [#allocation3], %s737_s19, %s737_s19, %s738_s20  }
 0x662   :  { %733 = dma.done.wait [#allocation3], 256  }
 0x663   :  { %734 = vsyncadd [#allocation3], 4294967040 }
 0x664   :  { %656 = vsyncpa [#allocation3], 1 }

</bundles_post_ra>
